<compile_context>
chip_gen: v6e
topology: v6e:2x2x1
jax: 0.10.0
libtpu: 0.0.40
codegen_flags: <defaults>
</compile_context>

<pallas_src>
import jax
import jax.numpy as jnp
from jax.experimental import pallas as pl
from jax.experimental.pallas import tpu as pltpu

LANES = 128
SUBLANES = 8


def _round_up(x, m):
    return (x + m - 1) // m * m


# -----------------------------------------------------------------------------
# Fused forward kernel
# -----------------------------------------------------------------------------
def _make_fused_kernel(layer, g_sizes, np_pad):
    """Fused GraphDeepOnet body for fixed layer count / static query-graph sizes.

    Ref order (one grid step = one evaluation b):
      a_ref      (Nk, Nk)        bf16  normalized adjacency of gk   (invariant)
      kn_ref     (1, Nk, 128)    f32   known-node features, col-padded
      pool_ref   (G, Nk)         bf16  mean-pool readout matrix      (invariant)
      nodes_ref  (1, Np, 128)    f32   query-node coords, row/col-padded
      w_ref      (L, 128, 128)   bf16  all weights, zero-padded      (invariant)
      b_ref      (L, 128)        f32   all biases, zero-padded       (invariant)
      out_ref    (1, Np, 128)    f32
    Weight index layout: [gcn_0..gcn_{layer-1}, branch_out, trunk1, trunk2,
                          out1, out2].
    """
    idx_bo = layer
    idx_t1, idx_t2 = layer + 1, layer + 2
    idx_o1, idx_o2 = layer + 3, layer + 4
    g_sizes = tuple(int(n) for n in g_sizes)

    def kernel(a_ref, kn_ref, pool_ref, nodes_ref, w_ref, b_ref, out_ref):
        def w(i):                       # (128, 128) bf16
            return w_ref[i]

        def b(i):                       # (1, 128) f32
            return b_ref[i:i + 1, :]

        a_bf = a_ref[...]                                   # (Nk, Nk) bf16

        # ---- branch: GCN stack; h held in bf16 between layers ---------------
        h = kn_ref[0].astype(jnp.bfloat16)                  # (Nk, 128)
        for l in range(layer):
            agg = jnp.dot(a_bf, h, preferred_element_type=jnp.float32)
            z = jnp.dot(agg.astype(jnp.bfloat16), w(l),
                        preferred_element_type=jnp.float32) + b(l)
            h = jnp.maximum(z, 0.0).astype(jnp.bfloat16)    # single cast/layer

        pooled = jnp.dot(pool_ref[...], h,
                         preferred_element_type=jnp.float32)        # (G, 128)
        field = jnp.dot(pooled.astype(jnp.bfloat16), w(idx_bo),
                        preferred_element_type=jnp.float32) + b(idx_bo)

        # ---- trunk MLP; first matmul kept f32 (coordinate precision) --------
        x = nodes_ref[0]                                     # (Np, 128) f32
        c = jnp.maximum(
            jnp.dot(x, w(idx_t1).astype(jnp.float32),
                    preferred_element_type=jnp.float32) + b(idx_t1), 0.0)
        coord = jnp.dot(c.astype(jnp.bfloat16), w(idx_t2),
                        preferred_element_type=jnp.float32) + b(idx_t2)

        # ---- combine: static contiguous per-graph row ranges (no scatter) ---
        row_ids = jax.lax.broadcasted_iota(jnp.int32, (np_pad, LANES), 0)
        per_row_field = jnp.zeros((np_pad, LANES), jnp.float32)
        start = 0
        for gi, n in enumerate(g_sizes):
            mask = (row_ids >= start) & (row_ids < start + n)
            per_row_field = jnp.where(mask, field[gi:gi + 1, :], per_row_field)
            start += n
        fused = per_row_field * coord                        # (Np, 128)

        # ---- output MLP; final weight already lane-padded -> dense store ----
        o = jnp.maximum(
            jnp.dot(fused.astype(jnp.bfloat16), w(idx_o1),
                    preferred_element_type=jnp.float32) + b(idx_o1), 0.0)
        out_ref[0] = jnp.dot(o.astype(jnp.bfloat16), w(idx_o2),
                             preferred_element_type=jnp.float32) + b(idx_o2)

    return kernel


# -----------------------------------------------------------------------------
# Parameters (PyTorch nn.Linear-style init, packed into two padded tensors)
# -----------------------------------------------------------------------------
def init_params(key, in_feats, hidden, out_feats, layer=3):
    assert hidden <= LANES and out_feats <= LANES and in_feats <= LANES
    dims = ([(in_feats, hidden)] + [(hidden, hidden)] * (layer - 1)   # GCN
            + [(hidden, hidden)]                                      # branch_out
            + [(in_feats, hidden), (hidden, hidden)]                  # trunk
            + [(hidden, hidden), (hidden, out_feats)])                # out MLP
    keys = jax.random.split(key, len(dims))
    ws, bs = [], []
    for k, (fi, fo) in zip(keys, dims):
        kw, kb = jax.random.split(k)
        lim = 1.0 / jnp.sqrt(fi)
        wm = jax.random.uniform(kw, (fi, fo), jnp.float32, -lim, lim)
        bv = jax.random.uniform(kb, (fo,), jnp.float32, -lim, lim)
        ws.append(jnp.pad(wm, ((0, LANES - fi), (0, LANES - fo))))
        bs.append(jnp.pad(bv, (0, LANES - fo)))
    return {"w": jnp.stack(ws).astype(jnp.bfloat16),   # (L, 128, 128)
            "b": jnp.stack(bs).astype(jnp.float32)}    # (L, 128)


# -----------------------------------------------------------------------------
# Forward wrappers (jit-able); everything hot runs in one pallas_call
# -----------------------------------------------------------------------------
def graph_deeponet_forward_batched(params, known_nodes, nodes, a_hat_gk,
                                   pool_gk, *, g_sizes, out_feats):
    """Batch of B independent evaluations sharing graph structure + params."""
    w_all, b_all = params["w"], params["b"]
    L = w_all.shape[0]
    layer = L - 5                              # static (from array shape)
    B, Nk, F = known_nodes.shape
    _, N, _ = nodes.shape
    G = pool_gk.shape[0]
    assert sum(g_sizes) == N

    np_pad = _round_up(max(N, SUBLANES), SUBLANES)
    kn_p = jnp.pad(known_nodes, ((0, 0), (0, 0), (0, LANES - F)))
    nodes_p = jnp.pad(nodes, ((0, 0), (0, np_pad - N), (0, LANES - F)))

    args = [a_hat_gk.astype(jnp.bfloat16),
            kn_p,
            pool_gk.astype(jnp.bfloat16),
            nodes_p,
            w_all,
            b_all]

    # advisory cost estimate so XLA schedules the host-side glue around the call
    flops_per = (layer * (2 * Nk * Nk * LANES + 2 * Nk * LANES * LANES)
                 + 2 * G * Nk * LANES + 2 * G * LANES * LANES
                 + 4 * np_pad * LANES * LANES        # trunk MLP
                 + 4 * np_pad * LANES * LANES)       # output MLP
    bytes_accessed = (sum(int(a.size) * a.dtype.itemsize for a in args)
                      + B * np_pad * LANES * 4)
    cost = pl.CostEstimate(flops=B * flops_per, transcendentals=0,
                           bytes_accessed=bytes_accessed)

    out = pl.pallas_call(
        _make_fused_kernel(layer, tuple(g_sizes), np_pad),
        grid=(B,),
        in_specs=[
            pl.BlockSpec((Nk, Nk), lambda b: (0, 0)),            # invariant
            pl.BlockSpec((1, Nk, LANES), lambda b: (b, 0, 0)),
            pl.BlockSpec((G, Nk), lambda b: (0, 0)),             # invariant
            pl.BlockSpec((1, np_pad, LANES), lambda b: (b, 0, 0)),
            pl.BlockSpec((L, LANES, LANES), lambda b: (0, 0, 0)),  # invariant
            pl.BlockSpec((L, LANES), lambda b: (0, 0)),            # invariant
        ],
        out_specs=pl.BlockSpec((1, np_pad, LANES), lambda b: (b, 0, 0)),
        out_shape=jax.ShapeDtypeStruct((B, np_pad, LANES), jnp.float32),
        compiler_params=pltpu.CompilerParams(
            dimension_semantics=("parallel",),
            vmem_limit_bytes=32 * 1024 * 1024),   # re-derive at production size
        cost_estimate=cost,
    )(*args)
    return out[:, :N, :out_feats]


def graph_deeponet_forward(params, known_nodes, nodes, a_hat_gk, pool_gk, *,
                           g_sizes, out_feats):
    """Single evaluation, matching the PyTorch module's forward signature."""
    out = graph_deeponet_forward_batched(
        params, known_nodes[None], nodes[None], a_hat_gk, pool_gk,
        g_sizes=g_sizes, out_feats=out_feats)
    return out[0]


# -----------------------------------------------------------------------------
# deterministic dense-graph construction (host-side glue)
# -----------------------------------------------------------------------------
def ring_block_adjacency(num_nodes_per_graph):
    """Block-diagonal ring graphs, self-loops, symmetric normalization (f32)."""
    total = sum(num_nodes_per_graph)
    a = jnp.zeros((total, total), jnp.float32)
    off = 0
    for n in num_nodes_per_graph:
        for i in range(n):
            j = (i + 1) % n
            a = a.at[off + i, off + j].set(1.0)
            a = a.at[off + j, off + i].set(1.0)
        off += n
    a = a + jnp.eye(total, dtype=jnp.float32)
    deg = jnp.sum(a, axis=1)
    d_inv_sqrt = 1.0 / jnp.sqrt(deg)
    return a * d_inv_sqrt[:, None] * d_inv_sqrt[None, :]


def mean_pool_matrix(num_nodes_per_graph):
    g = len(num_nodes_per_graph)
    total = sum(num_nodes_per_graph)
    p = jnp.zeros((g, total), jnp.float32)
    off = 0
    for gi, n in enumerate(num_nodes_per_graph):
        p = p.at[gi, off:off + n].set(1.0 / n)
        off += n
    return p


# -----------------------------------------------------------------------------
if __name__ == "__main__":
    in_feats, hidden, out_feats, layer = 4, 32, 2, 3

    # gk: 2 known-node graphs of 8 nodes each; g: 2 query graphs of 10 and 14
    gk_sizes = [8, 8]
    g_sizes = (10, 14)
    Nk, N = sum(gk_sizes), sum(g_sizes)

    key = jax.random.PRNGKey(0)
    k_par, k_known, k_nodes = jax.random.split(key, 3)

    params = init_params(k_par, in_feats, hidden, out_feats, layer=layer)
    known_nodes = jax.random.normal(k_known, (Nk, in_feats), jnp.float32)
    nodes = jax.random.normal(k_nodes, (N, in_feats), jnp.float32)

    a_hat_gk = ring_block_adjacency(gk_sizes)   # (Nk, Nk)
    pool_gk = mean_pool_matrix(gk_sizes)        # (G, Nk)

    fwd = jax.jit(graph_deeponet_forward,
                  static_argnames=("g_sizes", "out_feats"))
    out = fwd(params, known_nodes, nodes, a_hat_gk, pool_gk,
              g_sizes=g_sizes, out_feats=out_feats)
    out = jax.block_until_ready(out)

    assert out.shape == (N, out_feats), out.shape
    assert bool(jnp.all(jnp.isfinite(out)))
    print("KERNEL_OK")
</pallas_src>

<mosaic_0001>
module attributes {stable_mosaic.version = 11 : i64} {
  func.func @kernel(%arg0: i32, %arg1: memref<16x16xbf16, #tpu.memory_space<vmem>>, %arg2: memref<1x16x128xf32, #tpu.memory_space<vmem>>, %arg3: memref<2x16xbf16, #tpu.memory_space<vmem>>, %arg4: memref<1x24x128xf32, #tpu.memory_space<vmem>>, %arg5: memref<8x128x128xbf16, #tpu.memory_space<vmem>>, %arg6: memref<8x128xf32, #tpu.memory_space<vmem>>, %arg7: memref<1x24x128xf32, #tpu.memory_space<vmem>>) attributes {dimension_semantics = [#tpu.dimension_semantics<parallel>], iteration_bounds = array<i64: 1>, scalar_prefetch = 0 : i64, scratch_operands = 0 : i64, tpu.core_type = #tpu.core_type<tc>, window_params = [{pipeline_mode = #tpu.pipeline_mode<synchronous>, transform_indices = @transform_0, window_bounds = array<i64: 16, 16>}, {transform_indices = @transform_1, window_bounds = array<i64: 1, 16, 128>}, {pipeline_mode = #tpu.pipeline_mode<synchronous>, transform_indices = @transform_2, window_bounds = array<i64: 2, 16>}, {transform_indices = @transform_3, window_bounds = array<i64: 1, 24, 128>}, {pipeline_mode = #tpu.pipeline_mode<synchronous>, transform_indices = @transform_4, window_bounds = array<i64: 8, 128, 128>}, {pipeline_mode = #tpu.pipeline_mode<synchronous>, transform_indices = @transform_5, window_bounds = array<i64: 8, 128>}, {transform_indices = @transform_6, window_bounds = array<i64: 1, 24, 128>}]} {
    %c0 = arith.constant 0 : index
    %c0_0 = arith.constant 0 : index
    %0 = vector.load %arg1[%c0, %c0_0] : memref<16x16xbf16, #tpu.memory_space<vmem>>, vector<16x16xbf16>
    %c0_1 = arith.constant 0 : index
    %c0_2 = arith.constant 0 : index
    %c0_3 = arith.constant 0 : index
    %1 = vector.load %arg2[%c0_1, %c0_2, %c0_3] : memref<1x16x128xf32, #tpu.memory_space<vmem>>, vector<1x16x128xf32>
    %2 = vector.shape_cast %1 : vector<1x16x128xf32> to vector<16x128xf32>
    %3 = arith.truncf %2 : vector<16x128xf32> to vector<16x128xbf16>
    %cst = arith.constant dense<0.000000e+00> : vector<16x128xf32>
    %4 = tpu.matmul %0, %3, %cst {dimension_numbers = #tpu.dot_dimension_numbers<[1], [0], [0], [1], [0, 0, 1, 1], [], []>} : vector<16x16xbf16>, vector<16x128xbf16>, vector<16x128xf32> -> vector<16x128xf32>
    %5 = arith.truncf %4 : vector<16x128xf32> to vector<16x128xbf16>
    %c0_4 = arith.constant 0 : index
    %c0_5 = arith.constant 0 : index
    %c0_6 = arith.constant 0 : index
    %6 = vector.load %arg5[%c0_4, %c0_5, %c0_6] : memref<8x128x128xbf16, #tpu.memory_space<vmem>>, vector<1x128x128xbf16>
    %7 = vector.shape_cast %6 : vector<1x128x128xbf16> to vector<128x128xbf16>
    %cst_7 = arith.constant dense<0.000000e+00> : vector<16x128xf32>
    %8 = tpu.matmul %5, %7, %cst_7 {dimension_numbers = #tpu.dot_dimension_numbers<[1], [0], [0], [1], [0, 0, 1, 1], [], []>} : vector<16x128xbf16>, vector<128x128xbf16>, vector<16x128xf32> -> vector<16x128xf32>
    %c0_8 = arith.constant 0 : index
    %c0_9 = arith.constant 0 : index
    %9 = vector.load %arg6[%c0_8, %c0_9] : memref<8x128xf32, #tpu.memory_space<vmem>>, vector<1x128xf32>
    %10 = vector.broadcast %9 : vector<1x128xf32> to vector<16x128xf32>
    %11 = arith.addf %8, %10 : vector<16x128xf32>
    %cst_10 = arith.constant 0.000000e+00 : f32
    %12 = vector.broadcast %cst_10 : f32 to vector<16x128xf32>
    %13 = arith.maximumf %11, %12 : vector<16x128xf32>
    %14 = arith.truncf %13 : vector<16x128xf32> to vector<16x128xbf16>
    %cst_11 = arith.constant dense<0.000000e+00> : vector<16x128xf32>
    %15 = tpu.matmul %0, %14, %cst_11 {dimension_numbers = #tpu.dot_dimension_numbers<[1], [0], [0], [1], [0, 0, 1, 1], [], []>} : vector<16x16xbf16>, vector<16x128xbf16>, vector<16x128xf32> -> vector<16x128xf32>
    %16 = arith.truncf %15 : vector<16x128xf32> to vector<16x128xbf16>
    %c1 = arith.constant 1 : index
    %c0_12 = arith.constant 0 : index
    %c0_13 = arith.constant 0 : index
    %17 = vector.load %arg5[%c1, %c0_12, %c0_13] : memref<8x128x128xbf16, #tpu.memory_space<vmem>>, vector<1x128x128xbf16>
    %18 = vector.shape_cast %17 : vector<1x128x128xbf16> to vector<128x128xbf16>
    %cst_14 = arith.constant dense<0.000000e+00> : vector<16x128xf32>
    %19 = tpu.matmul %16, %18, %cst_14 {dimension_numbers = #tpu.dot_dimension_numbers<[1], [0], [0], [1], [0, 0, 1, 1], [], []>} : vector<16x128xbf16>, vector<128x128xbf16>, vector<16x128xf32> -> vector<16x128xf32>
    %c1_15 = arith.constant 1 : index
    %c0_16 = arith.constant 0 : index
    %20 = vector.load %arg6[%c1_15, %c0_16] : memref<8x128xf32, #tpu.memory_space<vmem>>, vector<1x128xf32>
    %21 = vector.broadcast %20 : vector<1x128xf32> to vector<16x128xf32>
    %22 = arith.addf %19, %21 : vector<16x128xf32>
    %cst_17 = arith.constant 0.000000e+00 : f32
    %23 = vector.broadcast %cst_17 : f32 to vector<16x128xf32>
    %24 = arith.maximumf %22, %23 : vector<16x128xf32>
    %25 = arith.truncf %24 : vector<16x128xf32> to vector<16x128xbf16>
    %cst_18 = arith.constant dense<0.000000e+00> : vector<16x128xf32>
    %26 = tpu.matmul %0, %25, %cst_18 {dimension_numbers = #tpu.dot_dimension_numbers<[1], [0], [0], [1], [0, 0, 1, 1], [], []>} : vector<16x16xbf16>, vector<16x128xbf16>, vector<16x128xf32> -> vector<16x128xf32>
    %27 = arith.truncf %26 : vector<16x128xf32> to vector<16x128xbf16>
    %c2 = arith.constant 2 : index
    %c0_19 = arith.constant 0 : index
    %c0_20 = arith.constant 0 : index
    %28 = vector.load %arg5[%c2, %c0_19, %c0_20] : memref<8x128x128xbf16, #tpu.memory_space<vmem>>, vector<1x128x128xbf16>
    %29 = vector.shape_cast %28 : vector<1x128x128xbf16> to vector<128x128xbf16>
    %cst_21 = arith.constant dense<0.000000e+00> : vector<16x128xf32>
    %30 = tpu.matmul %27, %29, %cst_21 {dimension_numbers = #tpu.dot_dimension_numbers<[1], [0], [0], [1], [0, 0, 1, 1], [], []>} : vector<16x128xbf16>, vector<128x128xbf16>, vector<16x128xf32> -> vector<16x128xf32>
    %c2_22 = arith.constant 2 : index
    %c0_23 = arith.constant 0 : index
    %31 = vector.load %arg6[%c2_22, %c0_23] : memref<8x128xf32, #tpu.memory_space<vmem>>, vector<1x128xf32>
    %32 = vector.broadcast %31 : vector<1x128xf32> to vector<16x128xf32>
    %33 = arith.addf %30, %32 : vector<16x128xf32>
    %cst_24 = arith.constant 0.000000e+00 : f32
    %34 = vector.broadcast %cst_24 : f32 to vector<16x128xf32>
    %35 = arith.maximumf %33, %34 : vector<16x128xf32>
    %36 = arith.truncf %35 : vector<16x128xf32> to vector<16x128xbf16>
    %c0_25 = arith.constant 0 : index
    %c0_26 = arith.constant 0 : index
    %37 = vector.load %arg3[%c0_25, %c0_26] : memref<2x16xbf16, #tpu.memory_space<vmem>>, vector<2x16xbf16>
    %cst_27 = arith.constant dense<0.000000e+00> : vector<2x128xf32>
    %38 = tpu.matmul %37, %36, %cst_27 {dimension_numbers = #tpu.dot_dimension_numbers<[1], [0], [0], [1], [0, 0, 1, 1], [], []>} : vector<2x16xbf16>, vector<16x128xbf16>, vector<2x128xf32> -> vector<2x128xf32>
    %39 = arith.truncf %38 : vector<2x128xf32> to vector<2x128xbf16>
    %c3 = arith.constant 3 : index
    %c0_28 = arith.constant 0 : index
    %c0_29 = arith.constant 0 : index
    %40 = vector.load %arg5[%c3, %c0_28, %c0_29] : memref<8x128x128xbf16, #tpu.memory_space<vmem>>, vector<1x128x128xbf16>
    %41 = vector.shape_cast %40 : vector<1x128x128xbf16> to vector<128x128xbf16>
    %cst_30 = arith.constant dense<0.000000e+00> : vector<2x128xf32>
    %42 = tpu.matmul %39, %41, %cst_30 {dimension_numbers = #tpu.dot_dimension_numbers<[1], [0], [0], [1], [0, 0, 1, 1], [], []>} : vector<2x128xbf16>, vector<128x128xbf16>, vector<2x128xf32> -> vector<2x128xf32>
    %c3_31 = arith.constant 3 : index
    %c0_32 = arith.constant 0 : index
    %43 = vector.load %arg6[%c3_31, %c0_32] : memref<8x128xf32, #tpu.memory_space<vmem>>, vector<1x128xf32>
    %44 = vector.broadcast %43 : vector<1x128xf32> to vector<2x128xf32>
    %45 = arith.addf %42, %44 : vector<2x128xf32>
    %c0_33 = arith.constant 0 : index
    %c0_34 = arith.constant 0 : index
    %c0_35 = arith.constant 0 : index
    %46 = vector.load %arg4[%c0_33, %c0_34, %c0_35] : memref<1x24x128xf32, #tpu.memory_space<vmem>>, vector<1x24x128xf32>
    %47 = vector.shape_cast %46 : vector<1x24x128xf32> to vector<24x128xf32>
    %c4 = arith.constant 4 : index
    %c0_36 = arith.constant 0 : index
    %c0_37 = arith.constant 0 : index
    %48 = vector.load %arg5[%c4, %c0_36, %c0_37] : memref<8x128x128xbf16, #tpu.memory_space<vmem>>, vector<1x128x128xbf16>
    %49 = vector.shape_cast %48 : vector<1x128x128xbf16> to vector<128x128xbf16>
    %50 = arith.extf %49 : vector<128x128xbf16> to vector<128x128xf32>
    %cst_38 = arith.constant dense<0.000000e+00> : vector<24x128xf32>
    %51 = tpu.matmul %47, %50, %cst_38 {dimension_numbers = #tpu.dot_dimension_numbers<[1], [0], [0], [1], [0, 0, 1, 1], [], []>} : vector<24x128xf32>, vector<128x128xf32>, vector<24x128xf32> -> vector<24x128xf32>
    %c4_39 = arith.constant 4 : index
    %c0_40 = arith.constant 0 : index
    %52 = vector.load %arg6[%c4_39, %c0_40] : memref<8x128xf32, #tpu.memory_space<vmem>>, vector<1x128xf32>
    %53 = vector.broadcast %52 : vector<1x128xf32> to vector<24x128xf32>
    %54 = arith.addf %51, %53 : vector<24x128xf32>
    %cst_41 = arith.constant 0.000000e+00 : f32
    %55 = vector.broadcast %cst_41 : f32 to vector<24x128xf32>
    %56 = arith.maximumf %54, %55 : vector<24x128xf32>
    %57 = arith.truncf %56 : vector<24x128xf32> to vector<24x128xbf16>
    %c5 = arith.constant 5 : index
    %c0_42 = arith.constant 0 : index
    %c0_43 = arith.constant 0 : index
    %58 = vector.load %arg5[%c5, %c0_42, %c0_43] : memref<8x128x128xbf16, #tpu.memory_space<vmem>>, vector<1x128x128xbf16>
    %59 = vector.shape_cast %58 : vector<1x128x128xbf16> to vector<128x128xbf16>
    %cst_44 = arith.constant dense<0.000000e+00> : vector<24x128xf32>
    %60 = tpu.matmul %57, %59, %cst_44 {dimension_numbers = #tpu.dot_dimension_numbers<[1], [0], [0], [1], [0, 0, 1, 1], [], []>} : vector<24x128xbf16>, vector<128x128xbf16>, vector<24x128xf32> -> vector<24x128xf32>
    %c5_45 = arith.constant 5 : index
    %c0_46 = arith.constant 0 : index
    %61 = vector.load %arg6[%c5_45, %c0_46] : memref<8x128xf32, #tpu.memory_space<vmem>>, vector<1x128xf32>
    %62 = vector.broadcast %61 : vector<1x128xf32> to vector<24x128xf32>
    %63 = arith.addf %60, %62 : vector<24x128xf32>
    %64 = tpu.iota {dimensions = array<i32: 0>} : vector<24x128xi32>
    %cst_47 = arith.constant 0.000000e+00 : f32
    %65 = vector.broadcast %cst_47 : f32 to vector<24x128xf32>
    %c0_i32 = arith.constant 0 : i32
    %66 = vector.broadcast %c0_i32 : i32 to vector<24x128xi32>
    %67 = arith.cmpi sge, %64, %66 : vector<24x128xi32>
    %c10_i32 = arith.constant 10 : i32
    %68 = vector.broadcast %c10_i32 : i32 to vector<24x128xi32>
    %69 = arith.cmpi slt, %64, %68 : vector<24x128xi32>
    %70 = arith.andi %67, %69 : vector<24x128xi1>
    %71 = vector.extract_strided_slice %45 {offsets = [0, 0], sizes = [1, 128], strides = [1, 1]} : vector<2x128xf32> to vector<1x128xf32>
    %72 = vector.shape_cast %71 : vector<1x128xf32> to vector<1x128xf32>
    %73 = vector.broadcast %72 : vector<1x128xf32> to vector<24x128xf32>
    %74 = arith.select %70, %73, %65 : vector<24x128xi1>, vector<24x128xf32>
    %c10_i32_48 = arith.constant 10 : i32
    %75 = vector.broadcast %c10_i32_48 : i32 to vector<24x128xi32>
    %76 = arith.cmpi sge, %64, %75 : vector<24x128xi32>
    %c24_i32 = arith.constant 24 : i32
    %77 = vector.broadcast %c24_i32 : i32 to vector<24x128xi32>
    %78 = arith.cmpi slt, %64, %77 : vector<24x128xi32>
    %79 = arith.andi %76, %78 : vector<24x128xi1>
    %80 = vector.extract_strided_slice %45 {offsets = [1, 0], sizes = [1, 128], strides = [1, 1]} : vector<2x128xf32> to vector<1x128xf32>
    %81 = vector.shape_cast %80 : vector<1x128xf32> to vector<1x128xf32>
    %82 = vector.broadcast %81 : vector<1x128xf32> to vector<24x128xf32>
    %83 = arith.select %79, %82, %74 : vector<24x128xi1>, vector<24x128xf32>
    %84 = arith.mulf %83, %63 : vector<24x128xf32>
    %85 = arith.truncf %84 : vector<24x128xf32> to vector<24x128xbf16>
    %c6 = arith.constant 6 : index
    %c0_49 = arith.constant 0 : index
    %c0_50 = arith.constant 0 : index
    %86 = vector.load %arg5[%c6, %c0_49, %c0_50] : memref<8x128x128xbf16, #tpu.memory_space<vmem>>, vector<1x128x128xbf16>
    %87 = vector.shape_cast %86 : vector<1x128x128xbf16> to vector<128x128xbf16>
    %cst_51 = arith.constant dense<0.000000e+00> : vector<24x128xf32>
    %88 = tpu.matmul %85, %87, %cst_51 {dimension_numbers = #tpu.dot_dimension_numbers<[1], [0], [0], [1], [0, 0, 1, 1], [], []>} : vector<24x128xbf16>, vector<128x128xbf16>, vector<24x128xf32> -> vector<24x128xf32>
    %c6_52 = arith.constant 6 : index
    %c0_53 = arith.constant 0 : index
    %89 = vector.load %arg6[%c6_52, %c0_53] : memref<8x128xf32, #tpu.memory_space<vmem>>, vector<1x128xf32>
    %90 = vector.broadcast %89 : vector<1x128xf32> to vector<24x128xf32>
    %91 = arith.addf %88, %90 : vector<24x128xf32>
    %cst_54 = arith.constant 0.000000e+00 : f32
    %92 = vector.broadcast %cst_54 : f32 to vector<24x128xf32>
    %93 = arith.maximumf %91, %92 : vector<24x128xf32>
    %94 = arith.truncf %93 : vector<24x128xf32> to vector<24x128xbf16>
    %c7 = arith.constant 7 : index
    %c0_55 = arith.constant 0 : index
    %c0_56 = arith.constant 0 : index
    %95 = vector.load %arg5[%c7, %c0_55, %c0_56] : memref<8x128x128xbf16, #tpu.memory_space<vmem>>, vector<1x128x128xbf16>
    %96 = vector.shape_cast %95 : vector<1x128x128xbf16> to vector<128x128xbf16>
    %cst_57 = arith.constant dense<0.000000e+00> : vector<24x128xf32>
    %97 = tpu.matmul %94, %96, %cst_57 {dimension_numbers = #tpu.dot_dimension_numbers<[1], [0], [0], [1], [0, 0, 1, 1], [], []>} : vector<24x128xbf16>, vector<128x128xbf16>, vector<24x128xf32> -> vector<24x128xf32>
    %c7_58 = arith.constant 7 : index
    %c0_59 = arith.constant 0 : index
    %98 = vector.load %arg6[%c7_58, %c0_59] : memref<8x128xf32, #tpu.memory_space<vmem>>, vector<1x128xf32>
    %99 = vector.broadcast %98 : vector<1x128xf32> to vector<24x128xf32>
    %100 = arith.addf %97, %99 : vector<24x128xf32>
    %c0_60 = arith.constant 0 : index
    %c0_61 = arith.constant 0 : index
    %c0_62 = arith.constant 0 : index
    %101 = vector.load %arg7[%c0_60, %c0_61, %c0_62] : memref<1x24x128xf32, #tpu.memory_space<vmem>>, vector<1x24x128xf32>
    %102 = vector.shape_cast %101 : vector<1x24x128xf32> to vector<24x128xf32>
    %103 = vector.shape_cast %100 : vector<24x128xf32> to vector<1x24x128xf32>
    tpu.vector_store %arg7[%c0_60, %c0_61, %c0_62], %103 {strides = array<i32>} : memref<1x24x128xf32, #tpu.memory_space<vmem>>, vector<1x24x128xf32>,
    return
  }
  func.func @transform_0(%arg0: i32) -> (i32, i32) {
    %c0_i32 = arith.constant 0 : i32
    %c0_i32_0 = arith.constant 0 : i32
    %c0_i32_1 = arith.constant 0 : i32
    return %c0_i32, %c0_i32_0 : i32, i32
  }
  func.func @transform_1(%arg0: i32) -> (i32, i32, i32) {
    %c0_i32 = arith.constant 0 : i32
    %c0_i32_0 = arith.constant 0 : i32
    %c0_i32_1 = arith.constant 0 : i32
    return %arg0, %c0_i32, %c0_i32_0 : i32, i32, i32
  }
  func.func @transform_2(%arg0: i32) -> (i32, i32) {
    %c0_i32 = arith.constant 0 : i32
    %c0_i32_0 = arith.constant 0 : i32
    %c0_i32_1 = arith.constant 0 : i32
    return %c0_i32, %c0_i32_0 : i32, i32
  }
  func.func @transform_3(%arg0: i32) -> (i32, i32, i32) {
    %c0_i32 = arith.constant 0 : i32
    %c0_i32_0 = arith.constant 0 : i32
    %c0_i32_1 = arith.constant 0 : i32
    return %arg0, %c0_i32, %c0_i32_0 : i32, i32, i32
  }
  func.func @transform_4(%arg0: i32) -> (i32, i32, i32) {
    %c0_i32 = arith.constant 0 : i32
    %c0_i32_0 = arith.constant 0 : i32
    %c0_i32_1 = arith.constant 0 : i32
    %c0_i32_2 = arith.constant 0 : i32
    return %c0_i32, %c0_i32_0, %c0_i32_1 : i32, i32, i32
  }
  func.func @transform_5(%arg0: i32) -> (i32, i32) {
    %c0_i32 = arith.constant 0 : i32
    %c0_i32_0 = arith.constant 0 : i32
    %c0_i32_1 = arith.constant 0 : i32
    return %c0_i32, %c0_i32_0 : i32, i32
  }
  func.func @transform_6(%arg0: i32) -> (i32, i32, i32) {
    %c0_i32 = arith.constant 0 : i32
    %c0_i32_0 = arith.constant 0 : i32
    %c0_i32_1 = arith.constant 0 : i32
    return %arg0, %c0_i32, %c0_i32_0 : i32, i32, i32
  }
}

</mosaic_0001>

<bundles_post_ra>
// kernel: graph_deeponet_forward.1
= control target key start
LH: loop header
LB: loop body
LE: loop exit
PB: predicated region body
PF: predicated region fallthrough
CT: control target
= control target key end

     0   :  { %11 = vsyncpa [#allocation3], 0  ;;  %s1698_s21 = smov [#allocation2]   ;;  %s1878_s0 = inlined_call_operand.vmem [shape: bf16[16,16], index: 0, kind: input, shape index: {}]   ;;  %s1879_s1 = inlined_call_operand.vmem [shape: f32[1,16,128], index: 1, kind: input, shape index: {}]   ;;  %s1880_s2 = inlined_call_operand.vmem [shape: bf16[2,16], index: 2, kind: input, shape index: {}]   ;;  %s1881_s3 = inlined_call_operand.vmem [shape: f32[1,24,128], index: 3, kind: input, shape index: {}]   ;;  %s1882_s4 = inlined_call_operand.hbm [shape: bf16[8,128,128], index: 4, kind: input, shape index: {}]   ;;  %s1883_s5 = inlined_call_operand.vmem [shape: f32[8,128], index: 5, kind: input, shape index: {}]   ;;  %s1884_s6 = inlined_call_operand.vmem [shape: f32[1,24,128], index: 6, kind: output, shape index: {}]  }
   0x1   :  { %s25_s22 = sshll.u32 %s1698_s21, 4  ;;  %s26_s22 = int_to_ptr.vmem [resolvable:$true] %s25_s22 }
   0x2   :  { %s1684_s23 = scalar_lea.vmem %s26_s22, 8192  ;;  %p1689_p1 = scmp.lt.s32.totalorder %s26_s22, %s26_s22 }
   0x3   :  { %p1685_p0 = scmp.ne.s32.totalorder %s26_s22, %s1684_s23  ;;  %p1690_p2 = scmp.lt.s32.totalorder %s1684_s23, %s1684_s23 }
   0x5   :  { %p1691_p3 = por %p1690_p2, %p1689_p1 }
   0x7   :  { %p1692_p4 = pnand %p1691_p3, %p1685_p0 }
   0x9   :  { %1695 = shalt.err (!%p1692_p4)
}
   0xa   :  { %s1699_s24 = smov 64   ;;  %s1700_s25 = smov 4  }
   0xb   :  { %31 = dma.hbm_to_vmem [thread:$0]  %s1882_s4, 8192, %s26_s22, [#allocation3], %s1699_s24, %s1699_s24, %s1700_s25  }
   0xc   :  { %1696 = dma.done.wait [#allocation3], 8192  }
   0xd   :  { %1697 = vsyncadd [#allocation3], 4294959104  ;;  %v1701_v0 = vmov 0.0   ;;  %vm1702_vm0 = vmmov 0   ;;  %v40_v1 = vld [vmem:[%s1879_s1] sm:$0xff]  ;;  %v41_v2 = vld [vmem:[%s1879_s1 + $0x8] sm:$0xff] }
   0xe   :  { %1409 = vmatprep.subr.bf16.mxu1 %v1701_v0  ;;  %1411 = vmatprep.mubr.msk.bf16.mxu1 %vm1702_vm0, %v1701_v0  ;;  %v42_v3 = vpack.c.bf16 %v41_v2, %v40_v1  ;;  %v1756_v4 = vld [vmem:[%s1878_s0] sm:$0xff]   ;;  %vm48_vm1 = vcmask 130048   ;;  %v1620_v5 = vld [vmem:[#allocation2 + $0x38] sm:$0xff]   ;;  %v1621_v6 = vld [vmem:[#allocation2 + $0x30] sm:$0xff]  }
   0xf   :  { %1435 = vmatprep.subr.bf16.mxu0 %v1701_v0  ;;  %1437 = vmatprep.mubr.msk.bf16.mxu0 %vm1702_vm0, %v1701_v0  ;;  %v1622_v7 = vld [vmem:[#allocation2 + $0x28] sm:$0xff]   ;;  %v1623_v8 = vld [vmem:[#allocation2 + $0x20] sm:$0xff]   ;;  %v1624_v9 = vld [vmem:[#allocation2 + $0x18] sm:$0xff]  }
  0x10   :  { %1410 = vmatpush3.bf16.msra.mxu1 %v42_v3  ;;  %v1625_v10 = vld [vmem:[#allocation2 + $0x10] sm:$0xff]   ;;  %v1626_v11 = vld [vmem:[#allocation2 + $0x8] sm:$0xff]   ;;  %v1627_v12 = vld [vmem:[#allocation2] sm:$0xff]  }
  0x11   :  { %1415 = vmatprep.subr.bf16.mxu1 %v1701_v0  ;;  %v1210_v18 = vld [vmem:[%s1883_s5] ss:$0 sm:$0xff]  ;;  %v1628_v28 = vld [vmem:[#allocation2 + $0x78] sm:$0xff]   ;;  %v1629_v29 = vld [vmem:[#allocation2 + $0x70] sm:$0xff]  }
  0x12   :  { %v1630_v30 = vld [vmem:[#allocation2 + $0x68] sm:$0xff]   ;;  %v1631_v31 = vld [vmem:[#allocation2 + $0x60] sm:$0xff]   ;;  %v1632_v32 = vld [vmem:[#allocation2 + $0x58] sm:$0xff]  }
  0x13   :  { %1412 = vmatmul.mubr.msk.bf16.vlgmr.msra.gmra.mxu1 %vm48_vm1, %v1756_v4  ;;  %v1633_v33 = vld [vmem:[#allocation2 + $0x50] sm:$0xff]   ;;  %v1634_v34 = vld [vmem:[#allocation2 + $0x48] sm:$0xff]   ;;  %v1635_v35 = vld [vmem:[#allocation2 + $0x40] sm:$0xff]  }
  0x14   :  { %1416 = vmatpush3.bf16.msra.mxu1 %v1620_v5  ;;  %1431 = vmatprep.mubr.msk.bf16.mxu1 %vm1702_vm0, %v1701_v0  ;;  %v1220_v41 = vld [vmem:[%s1883_s5 + $0x1] ss:$0 sm:$0xff]  ;;  %v1636_v51 = vld [vmem:[#allocation2 + $0xb8] sm:$0xff]   ;;  %v1637_v52 = vld [vmem:[#allocation2 + $0xb0] sm:$0xff]  }
  0x15   :  { %1417 = vmatprep.subr.bf16.mxu1 %v1701_v0  ;;  %v1638_v53 = vld [vmem:[#allocation2 + $0xa8] sm:$0xff]   ;;  %v1639_v54 = vld [vmem:[#allocation2 + $0xa0] sm:$0xff]   ;;  %v1640_v55 = vld [vmem:[#allocation2 + $0x98] sm:$0xff]  }
  0x16   :  { %v1641_v56 = vld [vmem:[#allocation2 + $0x90] sm:$0xff]   ;;  %v1642_v57 = vld [vmem:[#allocation2 + $0x88] sm:$0xff]   ;;  %v1643_v58 = vld [vmem:[#allocation2 + $0x80] sm:$0xff]  }
  0x17   :  { %v1315_v1 = vld [vmem:[#allocation2 + $0x138] sm:$0xff]  }
  0x18   :  { %1418 = vmatpush3.bf16.msra.mxu1 %v1621_v6  ;;  %v1308_v2 = vunpack.c.h.bf16 %v1315_v1  ;;  %v1307_v3 = vunpack.c.l.bf16 %v1315_v1  ;;  %v1654_v1 = vld [vmem:[#allocation2 + $0x168] sm:$0xff]  }
  0x19   :  { %1419 = vmatprep.subr.bf16.mxu1 %v1701_v0 }
  0x1c   :  { %1420 = vmatpush3.bf16.msra.mxu1 %v1622_v7  ;;  %v1313_v7 = vld [vmem:[#allocation2 + $0x128] sm:$0xff]  }
  0x1d   :  { %1421 = vmatprep.subr.bf16.mxu1 %v1701_v0 }
  0x20   :  { %1422 = vmatpush3.bf16.msra.mxu1 %v1623_v8  ;;  %v1300_v8 = vunpack.c.h.bf16 %v1313_v7 }
  0x21   :  { %1423 = vmatprep.subr.bf16.mxu1 %v1701_v0 }
  0x24   :  { %1424 = vmatpush3.bf16.msra.mxu1 %v1624_v9  ;;  %v1299_v9 = vunpack.c.l.bf16 %v1313_v7 }
  0x25   :  { %1425 = vmatprep.subr.bf16.mxu1 %v1701_v0 }
  0x28   :  { %1426 = vmatpush3.bf16.msra.mxu1 %v1625_v10  ;;  %v1312_v10 = vld [vmem:[#allocation2 + $0x120] sm:$0xff]  }
  0x29   :  { %1427 = vmatprep.subr.bf16.mxu1 %v1701_v0 }
  0x2c   :  { %1428 = vmatpush3.bf16.msra.mxu1 %v1626_v11  ;;  %v1296_v11 = vunpack.c.h.bf16 %v1312_v10 }
  0x2d   :  { %1429 = vmatprep.subr.bf16.mxu1 %v1701_v0 }
  0x30   :  { %1430 = vmatpush3.bf16.msra.mxu1 %v1627_v12  ;;  %v1295_v12 = vunpack.c.l.bf16 %v1312_v10 }
  0x31   :  { %1461 = vmatprep.subr.bf16.mxu1 %v1701_v0 }
  0xd3   :  { %v86_v13 = vpop.f32.mrf.mxu1 }
  0xd5   :  { %v1413_v14 = vpop.f32.mrf.mxu1 }
  0xd7   :  { %v89_v15 = vpop.f32.mrf.mxu1 }
  0xd8   :  { %v93_v16 = vpack.c.bf16 %v89_v15, %v86_v13  ;;  %v1311_v13 = vld [vmem:[#allocation2 + $0x118] sm:$0xff]  }
  0xd9   :  { %v1414_v17 = vpop.f32.mrf.mxu1  ;;  %v1292_v14 = vunpack.c.h.bf16 %v1311_v13  ;;  %v1291_v15 = vunpack.c.l.bf16 %v1311_v13  ;;  %v1662_v13 = vld [vmem:[#allocation2 + $0x1a8] sm:$0xff]  }
  0xda   :  { %1432 = vmatmul.mubr.bf16.vlgmr.msra.gmra.mxu1 %v93_v16  ;;  %v1310_v16 = vld [vmem:[#allocation2 + $0x110] sm:$0xff]  }
  0xdb   :  { %1463 = vmatprep.mubr.msk.bf16.mxu1 %vm1702_vm0, %v1701_v0  ;;  %v1288_v17 = vunpack.c.h.bf16 %v1310_v16 }
 0x19a   :  { %v197_v19 = vpop.f32.mrf.mxu1 }
 0x19b   :  { %v198_v21 = vadd.f32 %v1210_v18, %v197_v19  ;;  %v1287_v19 = vunpack.c.l.bf16 %v1310_v16  ;;  %v1665_v16 = vld [vmem:[#allocation2 + $0x190] sm:$0xff]  }
 0x19c   :  { %v1433_v20 = vpop.f32.mrf.mxu1 }
 0x19d   :  { %v204_v25 = vmax.f32 %v198_v21, 0.0  ;;  %v1278_v21 = vld [vmem:[#allocation2 + $0x100] sm:$0xff]  }
 0x19e   :  { %v200_v22 = vpop.f32.mrf.mxu1 }
 0x19f   :  { %v201_v23 = vadd.f32 %v1210_v18, %v200_v22  ;;  %v1309_v18 = vld [vmem:[#allocation2 + $0x108] sm:$0xff]  }
 0x1a0   :  { %v1434_v24 = vpop.f32.mrf.mxu1  ;;  %v1284_v20 = vunpack.c.h.bf16 %v1309_v18  ;;  %v1283_v22 = vunpack.c.l.bf16 %v1309_v18  ;;  %v1667_v18 = vld [vmem:[#allocation2 + $0x180] sm:$0xff]  }
 0x1a1   :  { %v205_v26 = vmax.f32 %v201_v23, 0.0  ;;  %v1280_v23 = vunpack.c.h.bf16 %v1278_v21  ;;  %v1279_v24 = vunpack.c.l.bf16 %v1278_v21  ;;  %v1670_v21 = vld [vmem:[#allocation2 + $0x1e8] sm:$0xff]  }
 0x1a3   :  { %v206_v27 = vpack.c.bf16 %v205_v26, %v204_v25  ;;  %v674_v25 = vld [vmem:[%s1881_s3] sm:$0xff]  ;;  %v675_v26 = vld [vmem:[%s1881_s3 + $0x8] sm:$0xff] }
 0x1a5   :  { %1436 = vmatpush3.bf16.msra.mxu0 %v206_v27  ;;  %v676_v27 = vld [vmem:[%s1881_s3 + $0x10] sm:$0xff] }
 0x1a6   :  { %1441 = vmatprep.subr.bf16.mxu0 %v1701_v0 }
 0x1a8   :  { %1438 = vmatmul.mubr.msk.bf16.vlgmr.msra.gmra.mxu0 %vm48_vm1, %v1756_v4 }
 0x1a9   :  { %1442 = vmatpush3.bf16.msra.mxu0 %v1628_v28  ;;  %1457 = vmatprep.mubr.msk.bf16.mxu0 %vm1702_vm0, %v1701_v0  ;;  %v1230_v28 = vld [vmem:[%s1883_s5 + $0x2] ss:$0 sm:$0xff] }
 0x1aa   :  { %1443 = vmatprep.subr.bf16.mxu0 %v1701_v0 }
 0x1ad   :  { %1444 = vmatpush3.bf16.msra.mxu0 %v1629_v29 }
 0x1ae   :  { %1445 = vmatprep.subr.bf16.mxu0 %v1701_v0 }
 0x1b1   :  { %1446 = vmatpush3.bf16.msra.mxu0 %v1630_v30 }
 0x1b2   :  { %1447 = vmatprep.subr.bf16.mxu0 %v1701_v0 }
 0x1b5   :  { %1448 = vmatpush3.bf16.msra.mxu0 %v1631_v31 }
 0x1b6   :  { %1449 = vmatprep.subr.bf16.mxu0 %v1701_v0 }
 0x1b9   :  { %1450 = vmatpush3.bf16.msra.mxu0 %v1632_v32 }
 0x1ba   :  { %1451 = vmatprep.subr.bf16.mxu0 %v1701_v0 }
 0x1bd   :  { %1452 = vmatpush3.bf16.msra.mxu0 %v1633_v33 }
 0x1be   :  { %1453 = vmatprep.subr.bf16.mxu0 %v1701_v0 }
 0x1c1   :  { %1454 = vmatpush3.bf16.msra.mxu0 %v1634_v34 }
 0x1c2   :  { %1455 = vmatprep.subr.bf16.mxu0 %v1701_v0 }
 0x1c5   :  { %1456 = vmatpush3.bf16.msra.mxu0 %v1635_v35 }
 0x1c6   :  { %1487 = vmatprep.subr.bf16.mxu0 %v1701_v0 }
 0x268   :  { %v241_v36 = vpop.f32.mrf.mxu0 }
 0x26a   :  { %v1439_v37 = vpop.f32.mrf.mxu0 }
 0x26c   :  { %v244_v38 = vpop.f32.mrf.mxu0 }
 0x26d   :  { %v248_v39 = vpack.c.bf16 %v244_v38, %v241_v36  ;;  %v519_v38 = vld [vmem:[%s1880_s2] sm:$0x1] }
 0x26e   :  { %v1440_v40 = vpop.f32.mrf.mxu0 }
 0x26f   :  { %1458 = vmatmul.mubr.bf16.vlgmr.msra.gmra.mxu0 %v248_v39  ;;  %v1644_v39 = vld [vmem:[#allocation2 + $0xf8] sm:$0xff]   ;;  %v1645_v40 = vld [vmem:[#allocation2 + $0xf0] sm:$0xff]  }
 0x270   :  { %1489 = vmatprep.mubr.msk.bf16.mxu0 %vm1702_vm0, %v1701_v0 }
 0x32f   :  { %v353_v42 = vpop.f32.mrf.mxu0 }
 0x330   :  { %v354_v44 = vadd.f32 %v1220_v41, %v353_v42  ;;  %v1647_v42 = vld [vmem:[#allocation2 + $0xe0] sm:$0xff]  }
 0x331   :  { %v1459_v43 = vpop.f32.mrf.mxu0 }
 0x332   :  { %v360_v48 = vmax.f32 %v354_v44, 0.0  ;;  %v1648_v43 = vld [vmem:[#allocation2 + $0xd8] sm:$0xff]   ;;  %v1649_v44 = vld [vmem:[#allocation2 + $0xd0] sm:$0xff]  }
 0x333   :  { %v356_v45 = vpop.f32.mrf.mxu0 }
 0x334   :  { %v357_v46 = vadd.f32 %v1220_v41, %v356_v45  ;;  %v1646_v41 = vld [vmem:[#allocation2 + $0xe8] sm:$0xff]  }
 0x335   :  { %v1460_v47 = vpop.f32.mrf.mxu0  ;;  %v1650_v45 = vld [vmem:[#allocation2 + $0xc8] sm:$0xff]  }
 0x336   :  { %v361_v49 = vmax.f32 %v357_v46, 0.0  ;;  %v1651_v46 = vld [vmem:[#allocation2 + $0xc0] sm:$0xff]   ;;  %v1652_v47 = vld [vmem:[#allocation2 + $0x178] sm:$0xff]  }
 0x338   :  { %v362_v50 = vpack.c.bf16 %v361_v49, %v360_v48  ;;  %v1249_v49 = vld [vmem:[%s1883_s5 + $0x4] ss:$0 sm:$0xff] }
 0x33a   :  { %1462 = vmatpush3.bf16.msra.mxu1 %v362_v50 }
 0x33b   :  { %1467 = vmatprep.subr.bf16.mxu1 %v1701_v0 }
 0x33d   :  { %1464 = vmatmul.mubr.msk.bf16.vlgmr.msra.gmra.mxu1 %vm48_vm1, %v1756_v4  ;;  %v1314_v4 = vld [vmem:[#allocation2 + $0x130] sm:$0xff]  }
 0x33e   :  { %1468 = vmatpush3.bf16.msra.mxu1 %v1636_v51  ;;  %1483 = vmatprep.mubr.msk.bf16.mxu1 %vm1702_vm0, %v1701_v0  ;;  %v1304_v5 = vunpack.c.h.bf16 %v1314_v4  ;;  %v1303_v6 = vunpack.c.l.bf16 %v1314_v4  ;;  %v1656_v4 = vld [vmem:[#allocation2 + $0x158] sm:$0xff]  }
 0x33f   :  { %1469 = vmatprep.subr.bf16.mxu1 %v1701_v0 }
 0x342   :  { %1470 = vmatpush3.bf16.msra.mxu1 %v1637_v52 }
 0x343   :  { %1471 = vmatprep.subr.bf16.mxu1 %v1701_v0 }
 0x346   :  { %1472 = vmatpush3.bf16.msra.mxu1 %v1638_v53 }
 0x347   :  { %1473 = vmatprep.subr.bf16.mxu1 %v1701_v0 }
 0x34a   :  { %1474 = vmatpush3.bf16.msra.mxu1 %v1639_v54 }
 0x34b   :  { %1475 = vmatprep.subr.bf16.mxu1 %v1701_v0 }
 0x34e   :  { %1476 = vmatpush3.bf16.msra.mxu1 %v1640_v55 }
 0x34f   :  { %1477 = vmatprep.subr.bf16.mxu1 %v1701_v0 }
 0x352   :  { %1478 = vmatpush3.bf16.msra.mxu1 %v1641_v56 }
 0x353   :  { %1479 = vmatprep.subr.bf16.mxu1 %v1701_v0 }
 0x356   :  { %1480 = vmatpush3.bf16.msra.mxu1 %v1642_v57 }
 0x357   :  { %1481 = vmatprep.subr.bf16.mxu1 %v1701_v0 }
 0x35a   :  { %1482 = vmatpush3.bf16.msra.mxu1 %v1643_v58 }
 0x35b   :  { %1513 = vmatprep.subr.mxu1 %v1701_v0 }
 0x3fd   :  { %v397_v59 = vpop.f32.mrf.mxu1 }
 0x3ff   :  { %v1465_v60 = vpop.f32.mrf.mxu1 }
 0x401   :  { %v400_v61 = vpop.f32.mrf.mxu1 }
 0x402   :  { %v404_v62 = vpack.c.bf16 %v400_v61, %v397_v59  ;;  %v1653_v61 = vld [vmem:[#allocation2 + $0x170] sm:$0xff]  }
 0x403   :  { %v1466_v63 = vpop.f32.mrf.mxu1 }
 0x404   :  { %1484 = vmatmul.mubr.bf16.vlgmr.msra.gmra.mxu1 %v404_v62 }
 0x405   :  { %1545 = vmatprep.mubr.msk.f32.mxu1 %vm1702_vm0, %v1701_v0  ;;  %1514 = vmatpush3.msra.mxu1 %v1308_v2 }
 0x406   :  { %1515 = vmatprep.subr.mxu1 %v1701_v0 }
 0x407   :  { %1516 = vmatpush3.msra.mxu1 %v1307_v3  ;;  %v1655_v3 = vld [vmem:[#allocation2 + $0x160] sm:$0xff]  }
 0x408   :  { %1517 = vmatprep.subr.mxu1 %v1701_v0 }
 0x409   :  { %1518 = vmatpush3.msra.mxu1 %v1304_v5  ;;  %v1657_v5 = vld [vmem:[#allocation2 + $0x150] sm:$0xff]  }
 0x40a   :  { %1519 = vmatprep.subr.mxu1 %v1701_v0 }
 0x40b   :  { %1520 = vmatpush3.msra.mxu1 %v1303_v6  ;;  %v1658_v6 = vld [vmem:[#allocation2 + $0x148] sm:$0xff]  }
 0x40c   :  { %1521 = vmatprep.subr.mxu1 %v1701_v0 }
 0x40d   :  { %1522 = vmatpush3.msra.mxu1 %v1300_v8  ;;  %v1659_v8 = vld [vmem:[#allocation2 + $0x140] sm:$0xff]  }
 0x40e   :  { %1523 = vmatprep.subr.mxu1 %v1701_v0 }
 0x40f   :  { %1524 = vmatpush3.msra.mxu1 %v1299_v9 }
 0x410   :  { %1525 = vmatprep.subr.mxu1 %v1701_v0 }
 0x411   :  { %1526 = vmatpush3.msra.mxu1 %v1296_v11  ;;  %v1660_v11 = vld [vmem:[#allocation2 + $0x1b8] sm:$0xff]  }
 0x412   :  { %1527 = vmatprep.subr.mxu1 %v1701_v0 }
 0x413   :  { %1528 = vmatpush3.msra.mxu1 %v1295_v12  ;;  %v1661_v12 = vld [vmem:[#allocation2 + $0x1b0] sm:$0xff]  }
 0x414   :  { %1529 = vmatprep.subr.mxu1 %v1701_v0 }
 0x415   :  { %1530 = vmatpush3.msra.mxu1 %v1292_v14  ;;  %v1663_v14 = vld [vmem:[#allocation2 + $0x1a0] sm:$0xff]  }
 0x416   :  { %1531 = vmatprep.subr.mxu1 %v1701_v0 }
 0x417   :  { %1532 = vmatpush3.msra.mxu1 %v1291_v15  ;;  %v1664_v15 = vld [vmem:[#allocation2 + $0x198] sm:$0xff]  }
 0x418   :  { %1533 = vmatprep.subr.mxu1 %v1701_v0 }
 0x419   :  { %1534 = vmatpush3.msra.mxu1 %v1288_v17  ;;  %v1666_v17 = vld [vmem:[#allocation2 + $0x188] sm:$0xff]  }
 0x41a   :  { %1535 = vmatprep.subr.mxu1 %v1701_v0 }
 0x41b   :  { %1536 = vmatpush3.msra.mxu1 %v1287_v19  ;;  %v1668_v19 = vld [vmem:[#allocation2 + $0x1f8] sm:$0xff]  }
 0x41c   :  { %1537 = vmatprep.subr.mxu1 %v1701_v0 }
 0x41d   :  { %1538 = vmatpush3.msra.mxu1 %v1284_v20  ;;  %v1669_v20 = vld [vmem:[#allocation2 + $0x1f0] sm:$0xff]  }
 0x41e   :  { %1539 = vmatprep.subr.mxu1 %v1701_v0 }
 0x41f   :  { %1540 = vmatpush3.msra.mxu1 %v1283_v22  ;;  %v1671_v22 = vld [vmem:[#allocation2 + $0x1e0] sm:$0xff]  }
 0x420   :  { %1541 = vmatprep.subr.mxu1 %v1701_v0 }
 0x421   :  { %1542 = vmatpush3.msra.mxu1 %v1280_v23  ;;  %v1672_v23 = vld [vmem:[#allocation2 + $0x1d8] sm:$0xff]  }
 0x422   :  { %1543 = vmatprep.subr.mxu1 %v1701_v0 }
 0x423   :  { %1544 = vmatpush3.msra.mxu1 %v1279_v24 }
 0x424   :  { %1546 = vmatmul.mubr.f32.vlgmr.msra.gmra.mxu1 %v674_v25  ;;  %1574 = vmatprep.subr.bf16.mxu1 %v1660_v11 }
 0x425   :  { %1548 = vmatprep.mubr.msk.f32.mxu1 %vm1702_vm0, %v1701_v0  ;;  %1575 = vmatpush3.bf16.msra.mxu1 %v1660_v11 }
 0x426   :  { %1576 = vmatprep.subr.bf16.mxu1 %v1661_v12 }
 0x428   :  { %1549 = vmatmul.mubr.f32.gmra.mxu1 %v675_v26 }
 0x429   :  { %1551 = vmatprep.mubr.msk.f32.mxu1 %vm1702_vm0, %v1701_v0  ;;  %1577 = vmatpush3.bf16.msra.mxu1 %v1661_v12 }
 0x42a   :  { %1578 = vmatprep.subr.bf16.mxu1 %v1662_v13 }
 0x42c   :  { %1552 = vmatmul.mubr.f32.gmra.mxu1 %v676_v27 }
 0x42d   :  { %1579 = vmatpush3.bf16.msra.mxu1 %v1662_v13 }
 0x42e   :  { %1580 = vmatprep.subr.bf16.mxu1 %v1663_v14 }
 0x431   :  { %1581 = vmatpush3.bf16.msra.mxu1 %v1663_v14 }
 0x432   :  { %1582 = vmatprep.subr.bf16.mxu1 %v1664_v15 }
 0x435   :  { %1583 = vmatpush3.bf16.msra.mxu1 %v1664_v15 }
 0x436   :  { %1584 = vmatprep.subr.bf16.mxu1 %v1665_v16 }
 0x439   :  { %1585 = vmatpush3.bf16.msra.mxu1 %v1665_v16 }
 0x43a   :  { %1586 = vmatprep.subr.bf16.mxu1 %v1666_v17 }
 0x43d   :  { %1587 = vmatpush3.bf16.msra.mxu1 %v1666_v17 }
 0x43e   :  { %1588 = vmatprep.subr.bf16.mxu1 %v1667_v18 }
 0x441   :  { %1589 = vmatpush3.bf16.msra.mxu1 %v1667_v18 }
 0x4c4   :  { %v509_v29 = vpop.f32.mrf.mxu1 }
 0x4c5   :  { %v510_v31 = vadd.f32 %v1230_v28, %v509_v29 }
 0x4c6   :  { %v1485_v30 = vpop.f32.mrf.mxu1 }
 0x4c7   :  { %v516_v35 = vmax.f32 %v510_v31, 0.0  ;;  %v1240_v30 = vld [vmem:[%s1883_s5 + $0x3] ss:$0 sm:$0xff] }
 0x4c8   :  { %v512_v32 = vpop.f32.mrf.mxu1 }
 0x4c9   :  { %v513_v33 = vadd.f32 %v1230_v28, %v512_v32  ;;  %v918_v28 = vlaneseq }
 0x4ca   :  { %v1486_v34 = vpop.f32.mrf.mxu1 }
 0x4cb   :  { %v517_v36 = vmax.f32 %v513_v33, 0.0  ;;  %v919_v29 = vshrl.u32 %v918_v28, 7 }
 0x4cd   :  { %v518_v37 = vpack.c.bf16 %v517_v36, %v516_v35  ;;  %v933_v32 = vsub.s32 0, %v919_v29  ;;  %v920_v33 = vadd.s32 8, %v919_v29  ;;  %v949_v34 = vsub.s32 1, %v919_v29 }
 0x4cf   :  { %1488 = vmatpush3.bf16.msra.mxu0 %v518_v37  ;;  %v1250_v37 = vld [vmem:[%s1883_s5 + $0x5] ss:$0 sm:$0xff]  ;;  %vm926_vm2 = vcmp.lt.s32.totalorder %v920_v33, 10  ;;  %vm939_vm3 = vcmp.ge.s32.totalorder %v920_v33, 10 }
 0x4d0   :  { %1493 = vmatprep.subr.bf16.mxu0 %v1701_v0 }
 0x4d2   :  { %1490 = vmatmul.mubr.msk.bf16.vlgmr.msra.gmra.mxu0 %vm48_vm1, %v519_v38 }
 0x4d3   :  { %1494 = vmatpush3.bf16.msra.mxu0 %v1644_v39  ;;  %1509 = vmatprep.mubr.msk.bf16.mxu0 %vm1702_vm0, %v1701_v0 }
 0x4d4   :  { %1495 = vmatprep.subr.bf16.mxu0 %v1701_v0 }
 0x4d7   :  { %1496 = vmatpush3.bf16.msra.mxu0 %v1645_v40 }
 0x4d8   :  { %1497 = vmatprep.subr.bf16.mxu0 %v1701_v0 }
 0x4db   :  { %1498 = vmatpush3.bf16.msra.mxu0 %v1646_v41 }
 0x4dc   :  { %1499 = vmatprep.subr.bf16.mxu0 %v1701_v0 }
 0x4df   :  { %1500 = vmatpush3.bf16.msra.mxu0 %v1647_v42 }
 0x4e0   :  { %1501 = vmatprep.subr.bf16.mxu0 %v1701_v0 }
 0x4e3   :  { %1502 = vmatpush3.bf16.msra.mxu0 %v1648_v43 }
 0x4e4   :  { %1503 = vmatprep.subr.bf16.mxu0 %v1701_v0  ;;  %v781_v48 = vpop.f32.mrf.mxu1 }
 0x4e5   :  { %v782_v50 = vadd.f32 %v1249_v49, %v781_v48 }
 0x4e6   :  { %v1547_v51 = vpop.f32.mrf.mxu1 }
 0x4e7   :  { %1504 = vmatpush3.bf16.msra.mxu0 %v1649_v44  ;;  %v795_v53 = vmax.f32 %v782_v50, 0.0 }
 0x4e8   :  { %1505 = vmatprep.subr.bf16.mxu0 %v1701_v0  ;;  %v786_v52 = vpop.f32.mrf.mxu1 }
 0x4e9   :  { %v787_v54 = vadd.f32 %v1249_v49, %v786_v52  ;;  %v1673_v52 = vld [vmem:[#allocation2 + $0x1d0] sm:$0xff]  }
 0x4ea   :  { %v1550_v55 = vpop.f32.mrf.mxu1 }
 0x4eb   :  { %1506 = vmatpush3.bf16.msra.mxu0 %v1650_v45  ;;  %v796_v56 = vmax.f32 %v787_v54, 0.0  ;;  %v1675_v54 = vld [vmem:[#allocation2 + $0x1c0] sm:$0xff]  }
 0x4ec   :  { %1507 = vmatprep.subr.bf16.mxu0 %v1701_v0  ;;  %v791_v58 = vpop.f32.mrf.mxu1 }
 0x4ed   :  { %v798_v57 = vpack.c.bf16 %v796_v56, %v795_v53  ;;  %v792_v7 = vadd.f32 %v1249_v49, %v791_v58  ;;  %v1674_v53 = vld [vmem:[#allocation2 + $0x1c8] sm:$0xff]   ;;  %v1259_v56 = vld [vmem:[%s1883_s5 + $0x6] ss:$0 sm:$0xff] }
 0x4ee   :  { %v1553_v59 = vpop.f32.mrf.mxu1 }
 0x4ef   :  { %1508 = vmatpush3.bf16.msra.mxu0 %v1651_v46  ;;  %v797_v9 = vmax.f32 %v792_v7, 0.0 }
 0x4f0   :  { %1554 = vmatprep.subr.bf16.mxu0 %v1652_v47 }
 0x4f1   :  { %v799_v10 = vpack.c.bf16 %v797_v9, %v797_v9 }
 0x592   :  { %v557_v60 = vpop.f32.mrf.mxu0 }
 0x593   :  { %v563_v0 = vpack.c.bf16 %v557_v60, %v557_v60 }
 0x594   :  { %v1491_v62 = vpop.f32.mrf.mxu0 }
 0x595   :  { %1510 = vmatmul.mubr.bf16.vlgmr.msra.gmra.mxu0 %v563_v0 }
 0x596   :  { %1555 = vmatpush3.bf16.msra.mxu0 %v1652_v47  ;;  %v560_v63 = vpop.f32.mrf.mxu0  ;;  %1570 = vmatprep.mubr.bf16.mxu0 %v798_v57 }
 0x597   :  { %1556 = vmatprep.subr.bf16.mxu0 %v1653_v61 }
 0x598   :  { %v1492_v2 = vpop.f32.mrf.mxu0 }
 0x59a   :  { %1557 = vmatpush3.bf16.msra.mxu0 %v1653_v61 }
 0x59b   :  { %1558 = vmatprep.subr.bf16.mxu0 %v1654_v1 }
 0x59e   :  { %1559 = vmatpush3.bf16.msra.mxu0 %v1654_v1 }
 0x59f   :  { %1560 = vmatprep.subr.bf16.mxu0 %v1655_v3 }
 0x5a2   :  { %1561 = vmatpush3.bf16.msra.mxu0 %v1655_v3 }
 0x5a3   :  { %1562 = vmatprep.subr.bf16.mxu0 %v1656_v4 }
 0x5a6   :  { %1563 = vmatpush3.bf16.msra.mxu0 %v1656_v4  ;;  %v1268_v4 = vld [vmem:[%s1883_s5 + $0x7] ss:$0 sm:$0xff] }
 0x5a7   :  { %1564 = vmatprep.subr.bf16.mxu0 %v1657_v5 }
 0x5aa   :  { %1565 = vmatpush3.bf16.msra.mxu0 %v1657_v5 }
 0x5ab   :  { %1566 = vmatprep.subr.bf16.mxu0 %v1658_v6 }
 0x5ae   :  { %1567 = vmatpush3.bf16.msra.mxu0 %v1658_v6 }
 0x5af   :  { %1568 = vmatprep.subr.bf16.mxu0 %v1659_v8 }
 0x5b2   :  { %1569 = vmatpush3.bf16.msra.mxu0 %v1659_v8 }
 0x5b3   :  { %1594 = vmatprep.subr.bf16.mxu0 %v1668_v19 }
 0x5b5   :  { %1571 = vmatmul.mubr.bf16.vlgmr.msra.gmra.mxu0 %v799_v10 }
 0x5b6   :  { %1595 = vmatpush3.bf16.msra.mxu0 %v1668_v19 }
 0x5b7   :  { %1596 = vmatprep.subr.bf16.mxu0 %v1669_v20 }
 0x5ba   :  { %1597 = vmatpush3.bf16.msra.mxu0 %v1669_v20 }
 0x5bb   :  { %1598 = vmatprep.subr.bf16.mxu0 %v1670_v21 }
 0x5be   :  { %1599 = vmatpush3.bf16.msra.mxu0 %v1670_v21 }
 0x5bf   :  { %1600 = vmatprep.subr.bf16.mxu0 %v1671_v22 }
 0x5c2   :  { %1601 = vmatpush3.bf16.msra.mxu0 %v1671_v22 }
 0x5c3   :  { %1602 = vmatprep.subr.bf16.mxu0 %v1672_v23 }
 0x5c6   :  { %1603 = vmatpush3.bf16.msra.mxu0 %v1672_v23 }
 0x5c7   :  { %1604 = vmatprep.subr.bf16.mxu0 %v1673_v52 }
 0x5ca   :  { %1605 = vmatpush3.bf16.msra.mxu0 %v1673_v52 }
 0x5cb   :  { %1606 = vmatprep.subr.bf16.mxu0 %v1674_v53 }
 0x5ce   :  { %1607 = vmatpush3.bf16.msra.mxu0 %v1674_v53 }
 0x5cf   :  { %1608 = vmatprep.subr.bf16.mxu0 %v1675_v54 }
 0x5d2   :  { %1609 = vmatpush3.bf16.msra.mxu0 %v1675_v54 }
 0x655   :  { %v668_v24 = vpop.f32.mrf.mxu0 }
 0x656   :  { %v669_v31 = vadd.f32 %v1240_v30, %v668_v24 }
 0x657   :  { %v1511_v25 = vpop.f32.mrf.mxu0 }
 0x658   :  { %v934_v36 = vrot.slane %v669_v31, %v933_v32  ;;  %v950_v39 = vrot.slane %v669_v31, %v949_v34 }
 0x659   :  { %v671_v26 = vpop.f32.mrf.mxu0 }
 0x65a   :  { %v936_v42 = vsel %vm926_vm2, %v934_v36, 0.0 }
 0x65b   :  { %v1512_v27 = vpop.f32.mrf.mxu0  ;;  %v952_v47 = vsel %vm939_vm3, %v950_v39, %v936_v42 }
 0x675   :  { %v1572_v35 = vpop.f32.mrf.mxu0 }
 0x676   :  { %v913_v40 = vadd.f32 %v1572_v35, %v1250_v37 }
 0x677   :  { %v904_v38 = vpop.f32.mrf.mxu0 }
 0x678   :  { %v905_v43 = vadd.f32 %v1250_v37, %v904_v38  ;;  %v956_v46 = vmul.f32 %v950_v39, %v913_v40 }
 0x679   :  { %v1573_v41 = vpop.f32.mrf.mxu0 }
 0x67a   :  { %v954_v48 = vmul.f32 %v934_v36, %v905_v43  ;;  %v958_v51 = vpack.c.bf16 %v956_v46, %v956_v46 }
 0x67b   :  { %v907_v44 = vpop.f32.mrf.mxu0 }
 0x67c   :  { %v908_v45 = vadd.f32 %v1250_v37, %v907_v44 }
 0x67e   :  { %v955_v49 = vmul.f32 %v952_v47, %v908_v45 }
 0x680   :  { %v957_v50 = vpack.c.bf16 %v955_v49, %v954_v48 }
 0x682   :  { %1590 = vmatprep.mubr.bf16.mxu1 %v957_v50 }
 0x683   :  { %1591 = vmatmul.mubr.bf16.vlgmr.msra.gmra.mxu1 %v958_v51 }
 0x743   :  { %v1592_v55 = vpop.f32.mrf.mxu1 }
 0x744   :  { %v1072_v58 = vadd.f32 %v1592_v55, %v1259_v56 }
 0x745   :  { %v1063_v57 = vpop.f32.mrf.mxu1 }
 0x746   :  { %v1064_v60 = vadd.f32 %v1259_v56, %v1063_v57  ;;  %v1079_v62 = vmax.f32 %v1072_v58, 0.0 }
 0x747   :  { %v1593_v59 = vpop.f32.mrf.mxu1 }
 0x748   :  { %v1077_v63 = vmax.f32 %v1064_v60, 0.0  ;;  %v1081_v3 = vpack.c.bf16 %v1079_v62, %v1079_v62 }
 0x749   :  { %v1066_v0 = vpop.f32.mrf.mxu1 }
 0x74a   :  { %v1067_v61 = vadd.f32 %v1259_v56, %v1066_v0 }
 0x74c   :  { %v1078_v1 = vmax.f32 %v1067_v61, 0.0 }
 0x74e   :  { %v1080_v2 = vpack.c.bf16 %v1078_v1, %v1077_v63 }
 0x750   :  { %1610 = vmatprep.mubr.bf16.mxu0 %v1080_v2 }
 0x751   :  { %1611 = vmatmul.mubr.bf16.vlgmr.msra.gmra.mxu0 %v1081_v3 }
 0x811   :  { %v1612_v5 = vpop.f32.mrf.mxu0 }
 0x812   :  { %v1195_v6 = vadd.f32 %v1612_v5, %v1268_v4 }
 0x813   :  { %v1186_v7 = vpop.f32.mrf.mxu0 }
 0x814   :  { %1202 = vst [vmem:[%s1884_s6 + $0x10] sm:$0xff] %v1195_v6  ;;  %v1187_v8 = vadd.f32 %v1268_v4, %v1186_v7 }
 0x815   :  { %v1613_v9 = vpop.f32.mrf.mxu0 }
 0x816   :  { %1200 = vst [vmem:[%s1884_s6] sm:$0xff] %v1187_v8 }
 0x817   :  { %v1189_v10 = vpop.f32.mrf.mxu0 }
 0x818   :  { %v1190_v11 = vadd.f32 %v1268_v4, %v1189_v10 }
 0x81a   :  { %1201 = vst [vmem:[%s1884_s6 + $0x8] sm:$0xff] %v1190_v11 }
 0x81b   :  { %1207 = vsyncpa [#allocation3], 1 }

</bundles_post_ra>
